<compile_context>
chip_gen: v6e
topology: v6e:2x2x1
jax: 0.10.0
libtpu: 0.0.40
codegen_flags: <defaults>
</compile_context>

<pallas_src>
import functools

import jax
import jax.numpy as jnp
import numpy as np
from jax.experimental import pallas as pl
from jax.experimental.pallas import tpu as pltpu


# -----------------------------------------------------------------------------
# Fused kernel:  out = activation(x @ W1[e].T + b1[e]) @ W2t[e] + b2[e]
# (W2t is the pre-transposed h4toh weight, [E, d_hidden, d_model].)
# -----------------------------------------------------------------------------
def _expert_kernel(eid_ref, x_ref, w1_ref, b1_ref, w2_ref, b2_ref, o_ref,
                   acc_ref, *, activation, tn1):
    del eid_ref  # consumed only by the index_maps (scalar prefetch)
    j = pl.program_id(1)

    @pl.when(j == 0)
    def _():
        acc_ref[...] = jnp.zeros_like(acc_ref)

    x = x_ref[...]                                     # [tm, d_model]
    w1 = w1_ref[0]                                     # [tn1, d_model] (out, in)

    # htoh4 for this d_hidden tile: x @ W1_tile.T, f32 accumulation on the MXU.
    h = jax.lax.dot_general(
        x, w1, dimension_numbers=(((1,), (1,)), ((), ())),
        preferred_element_type=jnp.float32)            # [tm, tn1]

    # b1[e] stays resident for the whole row tile; slice this reduction step's
    # tn1-wide chunk (start is a multiple of tn1, hence 128-lane aligned).
    b1 = b1_ref[0, :, pl.ds(pl.multiple_of(j * tn1, tn1), tn1)]   # [1, tn1]
    h = h + b1.astype(jnp.float32)
    h = activation(h)                                  # f32 VPU/EUP math
    h = h.astype(x.dtype)                              # bf16 MXU path if input bf16

    w2 = w2_ref[0]                                     # [tn1, d_model] (pre-transposed)
    # h4toh partial product: standard-orientation matmul, accumulate in f32.
    acc_ref[...] += jax.lax.dot_general(
        h, w2, dimension_numbers=(((1,), (0,)), ((), ())),
        preferred_element_type=jnp.float32)

    @pl.when(j == pl.num_programs(1) - 1)
    def _():
        o_ref[...] = (acc_ref[...] +
                      b2_ref[0].astype(jnp.float32)).astype(o_ref.dtype)


def _vmem_limit_bytes(tm, tn1, d_model, d_hidden, x_itemsize, w_itemsize):
    """Scoped-VMEM budget for the chosen tiles (with headroom), capped at HW VMEM."""
    need = (2 * tm * d_model * x_itemsize            # x double buffer
            + 2 * tm * d_model * x_itemsize          # out double buffer
            + tm * d_model * 4                       # f32 accumulator scratch
            + 2 * 2 * tn1 * d_model * w_itemsize     # W1 + W2 tiles, double-buffered
            + 2 * (d_hidden + d_model) * 4)          # resident biases
    limit = int(need * 1.4) + (4 << 20)              # headroom for compiler scratch
    limit = max(limit, 32 << 20)
    try:
        cap = int(pltpu.get_tpu_info().vmem_capacity_bytes)   # 64 MiB/TC on v7x
    except Exception:
        cap = 64 << 20                               # conservative: fits every gen
    return min(limit, cap)


def _fused_expert_call(x_pad, expert_ids, w1, b1r, w2t, b2r, *, tm, tn1,
                       activation, weight_buffers, vmem_limit_bytes):
    t_pad, d_model = x_pad.shape
    num_expert, d_hidden, _ = w1.shape
    n_row_tiles = t_pad // tm
    n_h_tiles = d_hidden // tn1

    if vmem_limit_bytes is None:
        vmem_limit_bytes = _vmem_limit_bytes(
            tm, tn1, d_model, d_hidden,
            x_pad.dtype.itemsize, w1.dtype.itemsize)

    # Optional deeper weight buffering (v5e/v6e) to hide the DMA burst at row
    # tile boundaries; default 2 keeps the Pallas default (and v7x VMEM budget).
    wkw = {} if weight_buffers == 2 else {
        "pipeline_mode": pl.Buffered(weight_buffers)}

    grid_spec = pltpu.PrefetchScalarGridSpec(
        num_scalar_prefetch=1,
        grid=(n_row_tiles, n_h_tiles),
        in_specs=[
            pl.BlockSpec((tm, d_model), lambda r, j, eids: (r, 0)),
            pl.BlockSpec((1, tn1, d_model),
                         lambda r, j, eids: (eids[r], j, 0), **wkw),
            pl.BlockSpec((1, 1, d_hidden),
                         lambda r, j, eids: (eids[r], 0, 0)),
            pl.BlockSpec((1, tn1, d_model),
                         lambda r, j, eids: (eids[r], j, 0), **wkw),
            pl.BlockSpec((1, 1, d_model),
                         lambda r, j, eids: (eids[r], 0, 0)),
        ],
        out_specs=pl.BlockSpec((tm, d_model), lambda r, j, eids: (r, 0)),
        scratch_shapes=[pltpu.VMEM((tm, d_model), jnp.float32)],
    )

    # NOTE(v7x): "parallel" on the row axis shards row tiles across the two
    # TensorCores; both cores then stream expert weights from shared HBM.  If
    # tokens-per-expert is tiny, sharding the j axis + cross-core combine may
    # be preferable.
    return pl.pallas_call(
        functools.partial(_expert_kernel, activation=activation, tn1=tn1),
        out_shape=jax.ShapeDtypeStruct((t_pad, d_model), x_pad.dtype),
        grid_spec=grid_spec,
        compiler_params=pltpu.CompilerParams(
            dimension_semantics=("parallel", "arbitrary"),
            vmem_limit_bytes=int(vmem_limit_bytes)),
    )(expert_ids, x_pad, w1, b1r, w2t, b2r)


# -----------------------------------------------------------------------------
# quant_noise_FMoE forward-pre-hook emulation (training mode only).
# -----------------------------------------------------------------------------
def _apply_quant_noise(w, p, block_size, key):
    """Randomly drop [block_size]-wide blocks along in_features, scale 1/(1-p).

    TODO(synk): fuse this compact block mask into the kernel (VPU multiply on
    the already-resident weight tile) to remove this full read+modify+write
    HBM pass over the expert weights every training step.
    """
    num_expert, out_f, in_f = w.shape
    assert in_f % block_size == 0
    drop = jax.random.bernoulli(
        key, p, (num_expert, out_f, in_f // block_size, 1))
    w_blk = w.reshape(num_expert, out_f, in_f // block_size, block_size)
    scale = jnp.asarray(1.0 / (1.0 - p), w.dtype)
    return (jnp.where(drop, jnp.zeros((), w.dtype), w_blk) * scale).reshape(w.shape)


# -----------------------------------------------------------------------------
# Public forward: mirrors _Expert_quant_noise.forward(inp, fwd_expert_count).
# -----------------------------------------------------------------------------
def expert_quant_noise_forward(inp, fwd_expert_count, w1, b1, w2, b2, *,
                               activation=jax.nn.relu,
                               quant_noise=0.0, quant_noise_block_size=8,
                               training=False, rng_key=None,
                               tm=512, tn1=256, weight_buffers=2,
                               bucket_row_tiles=False,
                               compute_dtype=None,
                               vmem_limit_bytes=None):
    """
    inp:              [T, d_model] expert-sorted tokens (FMoE convention)
    fwd_expert_count: host-side int sequence of length num_expert (rows/expert)
    w1: [E, d_hidden, d_model], b1: [E, d_hidden]   (htoh4, PyTorch layout)
    w2: [E, d_model, d_hidden], b2: [E, d_model]    (h4toh, PyTorch layout)

    Tile guidance (weight-stream arithmetic intensity ~ tm FLOP/byte):
      v5e : tm=256, tn1=256
      v6e : tm=512, tn1=256 (tn1=512 if VMEM allows); weight_buffers=3 optional
      v7x : tm=512, tn1=256 (only 64 MiB VMEM/TC -- don't copy a v6e deep config)
    Use tm small (e.g. 128) only for tiny batches.  Run real workloads in bf16
    (compute_dtype=jnp.bfloat16): accumulation and activation stay f32, but the
    h4 intermediate is bf16 on that path (differs from pure-fp32 PyTorch).
    """
    counts = np.asarray(fwd_expert_count).astype(np.int64).reshape(-1)
    num_expert, d_hidden, d_model = w1.shape
    assert w2.shape == (num_expert, d_model, d_hidden)
    assert b1.shape == (num_expert, d_hidden) and b2.shape == (num_expert, d_model)
    assert int(counts.sum()) == inp.shape[0]
    assert tn1 % 128 == 0 and d_hidden % tn1 == 0

    if compute_dtype is not None:
        inp = inp.astype(compute_dtype)
        w1 = w1.astype(compute_dtype)
        w2 = w2.astype(compute_dtype)

    itemsize = np.dtype(inp.dtype).itemsize
    min_rows = {4: 8, 2: 16, 1: 32}.get(itemsize, 8)   # sublane packing
    assert tm % min_rows == 0, (
        f"tm={tm} must be a multiple of {min_rows} for {inp.dtype} inputs")

    # quant_noise_FMoE hook: block-drop the weights before the forward (training).
    if training and quant_noise > 0.0:
        k1, k2 = jax.random.split(rng_key)
        w1 = _apply_quant_noise(w1, quant_noise, quant_noise_block_size, k1)
        w2 = _apply_quant_noise(w2, quant_noise, quant_noise_block_size, k2)

    # One-time layout change: w2 -> [E, d_hidden, d_model] so each per-step DMA
    # is one contiguous slab and the second matmul is standard orientation.
    # (Cache this transposed copy with the params in a real deployment.)
    w2t = jnp.swapaxes(w2, 1, 2)
    b1r = b1.reshape(num_expert, 1, d_hidden)
    b2r = b2.reshape(num_expert, 1, d_model)

    # Build gather tables so (a) each row tile belongs to exactly one expert and
    # (b) pad/unpad are single jnp.take passes, not per-expert concatenates.
    T = int(inp.shape[0])
    tile_eids, src_chunks = [], []
    unpad_idx = np.empty(T, dtype=np.int32)
    off = pad_off = 0
    for e in range(num_expert):
        c = int(counts[e])
        if c == 0:
            continue
        n_tiles = -(-c // tm)
        rows = n_tiles * tm
        idx = np.full(rows, T, dtype=np.int32)        # T -> appended zero row
        idx[:c] = np.arange(off, off + c, dtype=np.int32)
        src_chunks.append(idx)
        tile_eids += [e] * n_tiles
        unpad_idx[off:off + c] = pad_off + np.arange(c, dtype=np.int32)
        off += c
        pad_off += rows

    if not tile_eids:
        return jnp.zeros((0, d_model), inp.dtype)

    if bucket_row_tiles:
        # Round the row-tile count up to a power of two so distinct token
        # distributions hit a small set of compiled grid shapes.  Extra tiles
        # run on zero rows for expert 0 and are dropped by the unpad gather
        # (wasted FLOPs only, no correctness impact).
        n_total = len(tile_eids)
        extra = (1 << (n_total - 1).bit_length()) - n_total
        if extra:
            tile_eids += [0] * extra
            src_chunks.append(np.full(extra * tm, T, dtype=np.int32))

    src_idx = np.concatenate(src_chunks)
    inp_z = jnp.concatenate([inp, jnp.zeros((1, d_model), inp.dtype)], axis=0)
    x_pad = jnp.take(inp_z, jnp.asarray(src_idx), axis=0)
    expert_ids = jnp.asarray(tile_eids, dtype=jnp.int32)

    # NOTE: padded rows still compute activation(b1) @ W2 + b2 != 0; they are
    # dropped by the unpad gather below -- do not remove that gather.
    out_pad = _fused_expert_call(
        x_pad, expert_ids, w1, b1r, w2t, b2r, tm=tm, tn1=tn1,
        activation=activation, weight_buffers=weight_buffers,
        vmem_limit_bytes=vmem_limit_bytes)

    return jnp.take(out_pad, jnp.asarray(unpad_idx), axis=0)


# -----------------------------------------------------------------------------
if __name__ == "__main__":
    key = jax.random.PRNGKey(0)
    k_inp, k_w1, k_b1, k_w2, k_b2, k_qn = jax.random.split(key, 6)

    num_expert, d_model, d_hidden = 2, 128, 256
    fwd_expert_count = [5, 11]                       # host-side, as FMoE provides
    total_tokens = sum(fwd_expert_count)

    inp = jax.random.normal(k_inp, (total_tokens, d_model), jnp.float32)
    w1 = jax.random.normal(k_w1, (num_expert, d_hidden, d_model), jnp.float32) * 0.05
    b1 = jax.random.normal(k_b1, (num_expert, d_hidden), jnp.float32) * 0.05
    w2 = jax.random.normal(k_w2, (num_expert, d_model, d_hidden), jnp.float32) * 0.05
    b2 = jax.random.normal(k_b2, (num_expert, d_model), jnp.float32) * 0.05

    p, bs = 0.1, 8
    out = expert_quant_noise_forward(
        inp, fwd_expert_count, w1, b1, w2, b2,
        activation=jax.nn.relu,
        quant_noise=p, quant_noise_block_size=bs,
        training=True, rng_key=k_qn,
        tm=8, tn1=128, bucket_row_tiles=True)        # tiny demo tiles
    out = jax.block_until_ready(out)

    # Pure-JAX reference with identically masked weights.
    k1, k2 = jax.random.split(k_qn)
    w1m = _apply_quant_noise(w1, p, bs, k1)
    w2m = _apply_quant_noise(w2, p, bs, k2)
    refs, off = [], 0
    for e, c in enumerate(fwd_expert_count):
        xr = inp[off:off + c]
        hr = jnp.maximum(xr @ w1m[e].T + b1[e], 0.0)
        refs.append(hr @ w2m[e].T + b2[e])
        off += c
    ref = jnp.concatenate(refs, axis=0)

    assert out.shape == (total_tokens, d_model)
    np.testing.assert_allclose(np.asarray(out), np.asarray(ref),
                               rtol=2e-2, atol=2e-2)
    print("KERNEL_OK")
</pallas_src>

<mosaic_0001>
module attributes {stable_mosaic.version = 11 : i64} {
  func.func @_expert_kernel(%arg0: i32, %arg1: i32, %arg2: memref<4xi32, #tpu.memory_space<smem>>, %arg3: memref<8x128xf32, #tpu.memory_space<vmem>>, %arg4: memref<1x128x128xf32, #tpu.memory_space<vmem>>, %arg5: memref<1x1x256xf32, #tpu.memory_space<vmem>>, %arg6: memref<1x128x128xf32, #tpu.memory_space<vmem>>, %arg7: memref<1x1x128xf32, #tpu.memory_space<vmem>>, %arg8: memref<8x128xf32, #tpu.memory_space<vmem>>, %arg9: memref<8x128xf32, #tpu.memory_space<vmem>>) attributes {dimension_semantics = [#tpu.dimension_semantics<parallel>, #tpu.dimension_semantics<arbitrary>], iteration_bounds = array<i64: 4, 2>, scalar_prefetch = 1 : i64, scratch_operands = 1 : i64, tpu.core_type = #tpu.core_type<tc>, window_params = [{transform_indices = @transform_0, window_bounds = array<i64: 8, 128>}, {transform_indices = @transform_1, window_bounds = array<i64: 1, 128, 128>}, {transform_indices = @transform_2, window_bounds = array<i64: 1, 1, 256>}, {transform_indices = @transform_3, window_bounds = array<i64: 1, 128, 128>}, {transform_indices = @transform_4, window_bounds = array<i64: 1, 1, 128>}, {transform_indices = @transform_5, window_bounds = array<i64: 8, 128>}]} {
    %c0_i32 = arith.constant 0 : i32
    %0 = arith.cmpi eq, %arg1, %c0_i32 : i32
    %1 = arith.extui %0 : i1 to i32
    %c0_i32_0 = arith.constant 0 : i32
    %2 = arith.cmpi ne, %1, %c0_i32_0 : i32
    scf.if %2 {
      %cst_17 = arith.constant 0.000000e+00 : f32
      %25 = vector.broadcast %cst_17 : f32 to vector<8x128xf32>
      %c0_18 = arith.constant 0 : index
      %c0_19 = arith.constant 0 : index
      %26 = vector.load %arg9[%c0_18, %c0_19] : memref<8x128xf32, #tpu.memory_space<vmem>>, vector<8x128xf32>
      tpu.vector_store %arg9[%c0_18, %c0_19], %25 {strides = array<i32>} : memref<8x128xf32, #tpu.memory_space<vmem>>, vector<8x128xf32>,
    } else {
    }
    %c0 = arith.constant 0 : index
    %c0_1 = arith.constant 0 : index
    %3 = vector.load %arg3[%c0, %c0_1] : memref<8x128xf32, #tpu.memory_space<vmem>>, vector<8x128xf32>
    %c0_2 = arith.constant 0 : index
    %c0_3 = arith.constant 0 : index
    %c0_4 = arith.constant 0 : index
    %4 = vector.load %arg4[%c0_2, %c0_3, %c0_4] : memref<1x128x128xf32, #tpu.memory_space<vmem>>, vector<1x128x128xf32>
    %5 = vector.shape_cast %4 : vector<1x128x128xf32> to vector<128x128xf32>
    %cst = arith.constant dense<0.000000e+00> : vector<8x128xf32>
    %6 = tpu.matmul %3, %5, %cst {dimension_numbers = #tpu.dot_dimension_numbers<[1], [1], [0], [0], [0, 0, 1, 0], [], []>} : vector<8x128xf32>, vector<128x128xf32>, vector<8x128xf32> -> vector<8x128xf32>
    %c128_i32 = arith.constant 128 : i32
    %7 = arith.muli %arg1, %c128_i32 : i32
    %8 = tpu.assume_multiple %7, 128 : i32
    %c0_5 = arith.constant 0 : index
    %c0_6 = arith.constant 0 : index
    %9 = arith.index_cast %8 : i32 to index
    %10 = vector.load %arg5[%c0_5, %c0_6, %9] : memref<1x1x256xf32, #tpu.memory_space<vmem>>, vector<1x1x128xf32>
    %11 = vector.shape_cast %10 : vector<1x1x128xf32> to vector<1x128xf32>
    %12 = vector.broadcast %11 : vector<1x128xf32> to vector<8x128xf32>
    %13 = arith.addf %6, %12 : vector<8x128xf32>
    %cst_7 = arith.constant 0.000000e+00 : f32
    %14 = vector.broadcast %cst_7 : f32 to vector<8x128xf32>
    %15 = arith.maximumf %13, %14 : vector<8x128xf32>
    %c0_8 = arith.constant 0 : index
    %c0_9 = arith.constant 0 : index
    %c0_10 = arith.constant 0 : index
    %16 = vector.load %arg6[%c0_8, %c0_9, %c0_10] : memref<1x128x128xf32, #tpu.memory_space<vmem>>, vector<1x128x128xf32>
    %17 = vector.shape_cast %16 : vector<1x128x128xf32> to vector<128x128xf32>
    %c0_11 = arith.constant 0 : index
    %c0_12 = arith.constant 0 : index
    %18 = vector.load %arg9[%c0_11, %c0_12] : memref<8x128xf32, #tpu.memory_space<vmem>>, vector<8x128xf32>
    %cst_13 = arith.constant dense<0.000000e+00> : vector<8x128xf32>
    %19 = tpu.matmul %15, %17, %cst_13 {dimension_numbers = #tpu.dot_dimension_numbers<[1], [0], [0], [1], [0, 0, 1, 1], [], []>} : vector<8x128xf32>, vector<128x128xf32>, vector<8x128xf32> -> vector<8x128xf32>
    %20 = arith.addf %18, %19 : vector<8x128xf32>
    %c0_14 = arith.constant 0 : index
    %c0_15 = arith.constant 0 : index
    %21 = vector.load %arg9[%c0_14, %c0_15] : memref<8x128xf32, #tpu.memory_space<vmem>>, vector<8x128xf32>
    tpu.vector_store %arg9[%c0_14, %c0_15], %20 {strides = array<i32>} : memref<8x128xf32, #tpu.memory_space<vmem>>, vector<8x128xf32>,
    %c1_i32 = arith.constant 1 : i32
    %22 = arith.cmpi eq, %arg1, %c1_i32 : i32
    %23 = arith.extui %22 : i1 to i32
    %c0_i32_16 = arith.constant 0 : i32
    %24 = arith.cmpi ne, %23, %c0_i32_16 : i32
    scf.if %24 {
      %c0_17 = arith.constant 0 : index
      %c0_18 = arith.constant 0 : index
      %25 = vector.load %arg9[%c0_17, %c0_18] : memref<8x128xf32, #tpu.memory_space<vmem>>, vector<8x128xf32>
      %c0_19 = arith.constant 0 : index
      %c0_20 = arith.constant 0 : index
      %c0_21 = arith.constant 0 : index
      %26 = vector.load %arg7[%c0_19, %c0_20, %c0_21] : memref<1x1x128xf32, #tpu.memory_space<vmem>>, vector<1x1x128xf32>
      %27 = vector.shape_cast %26 : vector<1x1x128xf32> to vector<1x128xf32>
      %28 = vector.broadcast %27 : vector<1x128xf32> to vector<8x128xf32>
      %29 = arith.addf %25, %28 : vector<8x128xf32>
      %c0_22 = arith.constant 0 : index
      %c0_23 = arith.constant 0 : index
      %30 = vector.load %arg8[%c0_22, %c0_23] : memref<8x128xf32, #tpu.memory_space<vmem>>, vector<8x128xf32>
      tpu.vector_store %arg8[%c0_22, %c0_23], %29 {strides = array<i32>} : memref<8x128xf32, #tpu.memory_space<vmem>>, vector<8x128xf32>,
    } else {
    }
    return
  }
  func.func @transform_0(%arg0: i32, %arg1: i32, %arg2: memref<4xi32, #tpu.memory_space<smem>>) -> (i32, i32) {
    %c0_i32 = arith.constant 0 : i32
    %c0_i32_0 = arith.constant 0 : i32
    return %arg0, %c0_i32 : i32, i32
  }
  func.func @transform_1(%arg0: i32, %arg1: i32, %arg2: memref<4xi32, #tpu.memory_space<smem>>) -> (i32, i32, i32) {
    %0 = arith.index_cast %arg0 : i32 to index
    %1 = memref.load %arg2[%0] : memref<4xi32, #tpu.memory_space<smem>>
    %c0_i32 = arith.constant 0 : i32
    %c0_i32_0 = arith.constant 0 : i32
    return %1, %arg1, %c0_i32 : i32, i32, i32
  }
  func.func @transform_2(%arg0: i32, %arg1: i32, %arg2: memref<4xi32, #tpu.memory_space<smem>>) -> (i32, i32, i32) {
    %0 = arith.index_cast %arg0 : i32 to index
    %1 = memref.load %arg2[%0] : memref<4xi32, #tpu.memory_space<smem>>
    %c0_i32 = arith.constant 0 : i32
    %c0_i32_0 = arith.constant 0 : i32
    %c0_i32_1 = arith.constant 0 : i32
    return %1, %c0_i32, %c0_i32_0 : i32, i32, i32
  }
  func.func @transform_3(%arg0: i32, %arg1: i32, %arg2: memref<4xi32, #tpu.memory_space<smem>>) -> (i32, i32, i32) {
    %0 = arith.index_cast %arg0 : i32 to index
    %1 = memref.load %arg2[%0] : memref<4xi32, #tpu.memory_space<smem>>
    %c0_i32 = arith.constant 0 : i32
    %c0_i32_0 = arith.constant 0 : i32
    return %1, %arg1, %c0_i32 : i32, i32, i32
  }
  func.func @transform_4(%arg0: i32, %arg1: i32, %arg2: memref<4xi32, #tpu.memory_space<smem>>) -> (i32, i32, i32) {
    %0 = arith.index_cast %arg0 : i32 to index
    %1 = memref.load %arg2[%0] : memref<4xi32, #tpu.memory_space<smem>>
    %c0_i32 = arith.constant 0 : i32
    %c0_i32_0 = arith.constant 0 : i32
    %c0_i32_1 = arith.constant 0 : i32
    return %1, %c0_i32, %c0_i32_0 : i32, i32, i32
  }
  func.func @transform_5(%arg0: i32, %arg1: i32, %arg2: memref<4xi32, #tpu.memory_space<smem>>) -> (i32, i32) {
    %c0_i32 = arith.constant 0 : i32
    %c0_i32_0 = arith.constant 0 : i32
    return %arg0, %c0_i32 : i32, i32
  }
}

</mosaic_0001>

<bundles_post_ra>
// kernel: tpu_custom_call.1
= control target key start
LH: loop header
LB: loop body
LE: loop exit
PB: predicated region body
PF: predicated region fallthrough
CT: control target
= control target key end

     0   :  { %s1301_s21 = smov [#allocation4]   ;;  %s1829_s0 = inlined_call_operand.hbm [shape: s32[4], index: 0, kind: input, shape index: {}]   ;;  %s1830_s1 = inlined_call_operand.hbm [shape: f32[32,128], index: 1, kind: input, shape index: {}]   ;;  %s1831_s2 = inlined_call_operand.hbm [shape: f32[2,256,128], index: 2, kind: input, shape index: {}]   ;;  %s1832_s3 = inlined_call_operand.vmem [shape: f32[2,1,256], index: 3, kind: input, shape index: {}]   ;;  %s1833_s4 = inlined_call_operand.hbm [shape: f32[2,256,128], index: 4, kind: input, shape index: {}]   ;;  %s1834_s5 = inlined_call_operand.vmem [shape: f32[2,1,128], index: 5, kind: input, shape index: {}]   ;;  %s1835_s6 = inlined_call_operand.hbm [shape: f32[32,128], index: 6, kind: output, shape index: {}]  }
   0x1   :  { %1855 = sst [smem:[#allocation32_spill]] %s1830_s1 }
   0x2   :  { %1856 = sst [smem:[#allocation33_spill]] %s1831_s2 }
   0x3   :  { %1857 = sst [smem:[#allocation34_spill]] %s1832_s3 }
   0x4   :  { %1858 = sst [smem:[#allocation35_spill]] %s1833_s4 }
   0x5   :  { %1859 = sst [smem:[#allocation36_spill]] %s1834_s5 }
   0x6   :  { %1860 = sst [smem:[#allocation37_spill]] %s1835_s6 }
   0x7   :  { %12 = dma.hbm_to_smem %s1829_s0, 16, %s1301_s21, [#allocation3] }
   0x8   :  { %1227 = dma.done.wait [#allocation3], 16 }
   0x9   :  { %1228 = vsyncadd [#allocation3], 4294967280 }
   0xa   :  { %14 = sfence }
   0xb   :  { %15 = vsyncpa [#allocation6], 0 }
   0xc   :  { %17 = vsyncpa [#allocation6 + $0x1], 0 }
   0xd   :  { %18 = vsyncpa [#allocation9], 0 }
   0xe   :  { %20 = vsyncpa [#allocation9 + $0x1], 0 }
   0xf   :  { %21 = vsyncpa [#allocation7], 0 }
  0x10   :  { %23 = vsyncpa [#allocation7 + $0x1], 0  ;;  %s1349_s24 = smov 0   ;;  %s1351_s25 = smov 0  }
  0x11   :  { %s1353_s26 = smov 0   ;;  %s1355_s27 = smov 0  }
  0x12   :  { %s1357_s28 = smov 0   ;;  %s1359_s0 = smov 0  }
  0x13   :  { %s1361_s29 = smov 0   ;;  %s1363_s30 = smov 0  }
  0x14   :  { %s1365_s7 = smov 0   ;;  %s1367_s8 = smov 0  }
  0x15   :  { %s1369_s9 = smov 0   ;;  %s1371_s10 = smov 0  }
  0x16   :  { %s1373_s11 = smov 0   ;;  %s1375_s12 = smov 0  }
  0x17 LB: > { %1861 = sst [smem:[#allocation21_spill]] %s1251_s25  ;;  %s38_s13 = sadd.s32 1, %s1291_s10  ;;  %s1299_s12 = sphi %s1375_s12, %s29_s12   ;;  %s1295_s11 = sphi %s1373_s11, %s1933_s11   ;;  %s1291_s10 = sphi %s1371_s10, %s1923_s10   ;;  %s1287_s9 = sphi %s1369_s9, %s1922_s9   ;;  %s1283_s8 = sphi %s1367_s8, %s1932_s8   ;;  %s1279_s7 = sphi %s1365_s7, %s1931_s7   ;;  %s1275_s30 = sphi %s1363_s30, %s1930_s30   ;;  %s1271_s29 = sphi %s1361_s29, %s1929_s29   ;;  %s1267_s0 = sphi %s1359_s0, %s1919_s0   ;;  %s1263_s28 = sphi %s1357_s28, %s1928_s28   ;;  %s1259_s27 = sphi %s1355_s27, %s1927_s27   ;;  %s1255_s26 = sphi %s1353_s26, %s1926_s26   ;;  %s1251_s25 = sphi %s1351_s25, %s1925_s25   ;;  %s1247_s24 = sphi %s1349_s24, %s1916_s24  }
  0x18   : > { %1862 = sst [smem:[#allocation22_spill]] %s1267_s0  ;;  %s41_s14 = sadd.s32 1, %s1295_s11 }
  0x19   : > { %1863 = sst [smem:[#allocation23_spill]] %s1283_s8  ;;  %p39_p0 = scmp.ge.s32.totalorder %s38_s13, 2 }
  0x1a   : > { %1864 = sst [smem:[#allocation24_spill]] %s1287_s9  ;;  %p1843_p1 = scmp.eq.s32.totalorder %s1299_s12, 0 }
  0x1b   : > { %1865 = sst [smem:[#allocation25_spill]] %s1291_s10  ;;  %s1935_s13 = smov (%p39_p0, %s38_s13), 0 }
  0x1c   : > { %1866 = sst [smem:[#allocation26_spill]] %s1295_s11  ;;  %s1937_s14 = smov (!%p39_p0, %s41_s14), %s1295_s11 }
  0x1d   : > { %s71_s15 = sld [smem:[#allocation4 + %s1295_s11]]  ;;  %s74_s17 = ssub.s32 %s1291_s10, %s1935_s13 }
  0x1e   : > { %1867 = sst [smem:[#allocation27_spill]] %s1935_s13  ;;  %p85_p2 = scmp.ne.s32.totalorder %s1267_s0, %s1263_s28 }
  0x1f   : > { %p43_p3 = scmp.ge.s32.totalorder %s1937_s14, 4  ;;  %s129_s19 = sld [smem:[#allocation4 + %s1295_s11]] }
  0x20   : > { %p1435_p5 = por %p85_p2, %p1843_p1  ;;  %s136_s20 = sadd.s32 1, %s1255_s26 }
  0x21   : > { %s1939_s14 = smov (%p43_p3, %s1937_s14), 0  ;;  %p143_p6 = scmp.ne.s32.totalorder %s1255_s26, %s1251_s25 }
  0x22   : > { %1869 = sst [smem:[#allocation28_spill]] %s1939_s14  ;;  %p1842_p8 = scmp.lt.s32.totalorder %s1299_s12, 8 }
  0x23   : > { %s72_s21 = sld [smem:[#allocation4 + %s1939_s14]]  ;;  %p1449_p7 = por %p143_p6, %p1843_p1 }
  0x24   : > { %s130_s22 = sld [smem:[#allocation4 + %s1939_s14]]  ;;  %s247_s13 = sand.u32 1, %s1267_s0  }
  0x25   : > { %s1870_s23 = scalar_select %p1449_p7, 1, 0 }
  0x26   : > { %s776_s6 = sshll.u32 %s247_s13, 7  ;;  %p1461_p9 = pnand %p1842_p8, %p1435_p5 }
  0x27   : > { %s249_s9 = scalar_lea.vmem [#allocation8], %s776_s6  ;;  %s1872_s8 = sadd.s32 1, %s1267_s0 }
  0x28   : > { %s259_s16 = sshll.u32 %s249_s9, 4  ;;  %p784_p12 = scmp.ge.s32.totalorder %s1299_s12, 1  ;;  %s1465_s16 = int_to_ptr.vmem [resolvable:$true] %s259_s16 }
  0x29   : > { %s73_s3 = ssub.s32 %s71_s15, %s72_s21  ;;  %p308_p13 = scmp.lt.s32.totalorder %s1299_s12, 9 }
  0x2a   : > { %s75_s1 = sor.u32 %s74_s17, %s73_s3  ;;  %s131_s4 = ssub.s32 %s129_s19, %s130_s22 }
  0x2b   : > { %p76_p10 = scmp.eq.s32.totalorder %s75_s1, 0  ;;  %s133_s13 = sor.u32 %s131_s4, %s74_s17 }
  0x2c   : > { %p134_p11 = scmp.eq.s32.totalorder %s133_s13, 0  ;;  %s1875_s18 = sshll.u32 %s1291_s10, 4 }
  0x2d   : > { %s1470_s25 = scalar_select %p76_p10, %s1267_s0, %s1872_s8  }
  0x2e   : > { %s1473_s15 = scalar_select %p134_p11, %s1255_s26, %s136_s20  }
  0x2f   : > { %1873 = sst [smem:[#allocation29_spill]] %s1470_s25  ;;  %p1499_p0 = pnand %p784_p12, %p308_p13 }
  0x30   : > { %1874 = sst [smem:[#allocation30_spill]] %s1473_s15  ;;  %p1063_p3 = pneg %p1461_p9 }
  0x31   : > { %s904_s6 = scalar_select %p1435_p5, [#allocation4], [#allocation12] }
  0x32   : > { %s905_s9 = scalar_select %p1435_p5, %s1295_s11, 0 }
  0x33   : > { %s1941_s6 = smov (!%p1842_p8, %s904_s6), [#allocation14]  ;;  %s1877_s2 = sld [smem:[#allocation33_spill]] }
  0x34   : > { %s1943_s9 = smov (!%p1842_p8, %s905_s9), 0 }
  0x35   : > { %s250_s1 = sld [smem:[%s1941_s6 + %s1943_s9]]  ;;  %s1878_s9 = sand.u32 1, %s1299_s12  }
  0x36   : > { %s907_s3 = scalar_select %p1449_p7, [#allocation4], [#allocation13] }
  0x37   : > { %s908_s4 = scalar_select %p1449_p7, %s1295_s11, 0 }
  0x38   : > { %s1945_s3 = smov (!%p1842_p8, %s907_s3), [#allocation15]  ;;  %s1510_s25 = scalar_lea.sflag [#allocation9], %s1878_s9 }
  0x39   : > { %s1947_s4 = smov (!%p1842_p8, %s908_s4), 0 }
  0x3a   : > { %s1495_s17 = sld [smem:[%s1945_s3 + %s1947_s4]] }
  0x3b   : > { %s778_s8 = sshll.u32 %s250_s1, 5 }
  0x3c   : > { %s256_s19 = sadd.s32 %s778_s8, %s1875_s18  ;;  %s1066_s8 = scalar_lea.hbm %s1877_s2, 8192 }
  0x3d   : > { %s1876_s20 = scalar_select %p1499_p0, 1, 0 }
  0x3e   : > { %s779_s21 = sshll.u32 %s256_s19, 7 }
  0x3f   : > { %s1506_s6 = scalar_lea.hbm %s1877_s2, %s779_s21 }
  0x40   : > { %s1061_s1 = scalar_lea.hbm %s1506_s6, 2048  ;;  %p1067_p10 = scmp.lt.s32.totalorder %s1506_s6, %s1877_s2 }
  0x41   : > { %p1062_p2 = scmp.ne.s32.totalorder %s1506_s6, %s1061_s1  ;;  %p1068_p11 = scmp.lt.s32.totalorder %s1066_s8, %s1061_s1 }
  0x43   : > { %p1064_p5 = pnand %p1063_p3, %p1062_p2  ;;  %p1069_p12 = por %p1068_p11, %p1067_p10 }
  0x45   : > { %p1065_p6 = pneg %p1064_p5 }
  0x47   : > { %p1070_p13 = pnand %p1069_p12, %p1065_p6 }
  0x49   : > { %1073 = shalt.err (!%p1070_p13)
}
  0x4a   : > { %s1074_s21 = scalar_lea.vmem %s1465_s16, 2048  ;;  %s1302_s22 = smov [#allocation8]  }
  0x4b   : > { %p1075_p8 = scmp.ne.s32.totalorder %s1465_s16, %s1074_s21  ;;  %s1079_s13 = sshll.u32 %s1302_s22, 4  ;;  %s1080_s13 = int_to_ptr.vmem [resolvable:$false] %s1079_s13 }
  0x4c   : > { %s1081_s9 = scalar_lea.vmem %s1080_s13, 4096  ;;  %p1082_p5 = scmp.lt.s32.totalorder %s1465_s16, %s1080_s13 }
  0x4d   : > { %p1077_p4 = pnand %p1075_p8, %p1063_p3  ;;  %p1083_p1 = scmp.lt.s32.totalorder %s1081_s9, %s1074_s21 }
  0x4f   : > { %p1078_p2 = pneg %p1077_p4  ;;  %p1084_p0 = por %p1083_p1, %p1082_p5 }
  0x51   : > { %p1085_p7 = pnand %p1084_p0, %p1078_p2 }
  0x53   : > { %1088 = shalt.err (!%p1085_p7)
}
  0x54   : > { %s1846_s1 = smov 128   ;;  %s1847_s3 = smov 8  }
  0x55   : > { %923 = dma.hbm_to_vmem [thread:$0]  (!%p1461_p9), %s1506_s6, 2048, %s1465_s16, %s1510_s25, %s1846_s1, %s1846_s1, %s1847_s3  }
  0x56   : > { %s782_s4 = sshll.u32 %s1495_s17, 5  ;;  %s1879_s8 = sshll.u32 %s1291_s10, 4 }
  0x57   : > { %s1880_s18 = sld [smem:[#allocation21_spill]]  ;;  %s289_s19 = sadd.s32 %s782_s4, %s1879_s8 }
  0x58   : > { %s783_s21 = sshll.u32 %s289_s19, 7  ;;  %s1881_s9 = sld [smem:[#allocation35_spill]] }
  0x59   : > { %s1543_s15 = sadd.s32 4294967295, %s1299_s12   ;;  %s771_s5 = sadd.s32 4294967294, %s1299_s12  }
  0x5a   : > { %s45_s16 = ssub.s32 %s1295_s11, %s1939_s14  ;;  %s48_s6 = sadd.s32 1, %s1279_s7 }
  0x5b   : > { %p46_p1 = scmp.eq.s32.totalorder %s45_s16, 0  ;;  %p55_p4 = scmp.ne.s32.totalorder %s1279_s7, %s1275_s30 }
  0x5c   : > { %p61_p7 = scmp.ne.s32.totalorder %s1275_s30, %s1271_s29  ;;  %p62_p8 = scmp.eq.s32.totalorder %s1543_s15, 0 }
  0x5d   : > { %s1555_s17 = scalar_select %p46_p1, %s1279_s7, %s48_s6  }
  0x5e   : > { %s1882_s2 = smov %s1881_s9  ;;  %s1540_s0 = scalar_lea.hbm %s1881_s9, %s783_s21 }
  0x5f   : > { %1883 = sst [smem:[#allocation31_spill]] %s1555_s17  ;;  %p1884_p9 = scmp.eq.s32.totalorder %s1299_s12, 0 }
  0x60   : > { %p1563_p3 = por %p62_p8, %p61_p7  ;;  %p1887_p6 = scmp.ne.s32.totalorder %s1263_s28, %s1259_s27 }
  0x61   : > { %p1559_p0 = por %p1884_p9, %p55_p4  ;;  %p149_p11 = scmp.ne.s32.totalorder %s1880_s18, %s1247_s24 }
  0x62   : > { %s1886_s8 = scalar_select %p1563_p3, 1, 0 }
  0x63   : > { %p1570_p10 = por %p1887_p6, %p62_p8  ;;  %p201_p12 = scmp.eq.s32.totalorder %s1543_s15, 7 }
  0x64   : > { %p207_p13 = scmp.eq.s32.totalorder %s771_s5, 7  ;;  %p1577_p2 = por %p149_p11, %p62_p8 }
  0x65   : > { %s1888_s19 = scalar_select %p1570_p10, 1, 0 }
  0x66   : > { %s1889_s21 = scalar_select %p1577_p2, 1, 0 }
  0x67   : > { %s227_s22 = sand.u32 1, %s1279_s7   ;;  %p1582_p5 = por %p201_p12, %p55_p4 }
  0x68   : > { %p1586_p1 = por %p207_p13, %p61_p7  ;;  %s774_s9 = sshll.u32 %s227_s22, 3 }
  0x69   : > { %s1890_s13 = scalar_select %p1582_p5, 1, 0 }
  0x6a   : > { %s1891_s27 = scalar_select %p1586_p1, 1, 0 }
  0x6b   : > { %s775_s16 = sshll.u32 %s1295_s11, 7  ;;  %s1892_s24 = sld [smem:[#allocation32_spill]] }
  0x6c   : > { %s231_s5 = scalar_lea.vmem [#allocation5], %s774_s9  ;;  %p1893_p8 = scmp.lt.s32.totalorder %s1299_s12, 8 }
  0x6d   : > { %s238_s3 = sshll.u32 %s231_s5, 4  ;;  %s280_s10 = sand.u32 1, %s1255_s26   ;;  %s239_s3 = int_to_ptr.vmem [resolvable:$true] %s238_s3 }
  0x6e   : > { %p1598_p9 = pnand %p1893_p8, %p1559_p0  ;;  %p1895_p4 = scmp.ne.s32.totalorder %s1870_s23, 0 }
  0x6f   : > { %p1896_p7 = pmov %p1893_p8  ;;  %s780_s11 = sshll.u32 %s280_s10, 7 }
  0x70   : > { %s228_s1 = scalar_lea.sflag [#allocation6], %s227_s22  ;;  %p1091_p11 = pneg %p1598_p9 }
  0x71   : > { %s236_s18 = scalar_lea.hbm %s1892_s24, %s775_s16  ;;  %p1607_p6 = pnand %p1896_p7, %p1895_p4 }
  0x72   : > { %s1102_s9 = scalar_lea.vmem %s239_s3, 128  ;;  %s1305_s4 = smov [#allocation5]  }
  0x73   : > { %p1103_p12 = scmp.ne.s32.totalorder %s239_s3, %s1102_s9  ;;  %s1107_s16 = sshll.u32 %s1305_s4, 4  ;;  %s1108_s16 = int_to_ptr.vmem [resolvable:$false] %s1107_s16 }
  0x74   : > { %s1109_s6 = scalar_lea.vmem %s1108_s16, 256  ;;  %p1110_p0 = scmp.lt.s32.totalorder %s239_s3, %s1108_s16 }
  0x75   : > { %p1105_p13 = pnand %p1103_p12, %p1091_p11  ;;  %p1111_p8 = scmp.lt.s32.totalorder %s1109_s6, %s1102_s9 }
  0x77   : > { %p1106_p1 = pneg %p1105_p13  ;;  %p1112_p5 = por %p1111_p8, %p1110_p0 }
  0x79   : > { %p1113_p2 = pnand %p1112_p5, %p1106_p1 }
  0x7b   : > { %1116 = shalt.err (!%p1113_p2)
}
  0x7c   : > { %918 = dma.hbm_to_vmem [thread:$0]  (!%p1598_p9), %s236_s18, 128, %s239_s3, %s228_s1  }
  0x7d   : > { %s282_s10 = scalar_lea.vmem [#allocation10], %s780_s11  ;;  %s1117_s22 = scalar_lea.hbm %s1540_s0, 2048 }
  0x7e   : > { %s292_s23 = sshll.u32 %s282_s10, 4  ;;  %p1118_p4 = scmp.ne.s32.totalorder %s1540_s0, %s1117_s22  ;;  %s1615_s23 = int_to_ptr.vmem [resolvable:$true] %s292_s23 }
  0x7f   : > { %p1119_p7 = pneg %p1607_p6  ;;  %s1122_s9 = scalar_lea.hbm %s1882_s2, 8192 }
  0x80   : > { %p1123_p2 = scmp.lt.s32.totalorder %s1540_s0, %s1882_s2  ;;  %p1124_p5 = scmp.lt.s32.totalorder %s1122_s9, %s1117_s22 }
  0x81   : > { %p1120_p11 = pnand %p1119_p7, %p1118_p4 }
  0x82   : > { %p1125_p1 = por %p1124_p5, %p1123_p2 }
  0x83   : > { %p1121_p12 = pneg %p1120_p11 }
  0x85   : > { %p1126_p9 = pnand %p1125_p1, %p1121_p12 }
  0x87   : > { %1129 = shalt.err (!%p1126_p9)
}
  0x88   : > { %s1130_s11 = scalar_lea.vmem %s1615_s23, 2048  ;;  %s1306_s3 = smov [#allocation10]  }
  0x89   : > { %p1131_p13 = scmp.ne.s32.totalorder %s1615_s23, %s1130_s11  ;;  %s1135_s18 = sshll.u32 %s1306_s3, 4  ;;  %s1136_s18 = int_to_ptr.vmem [resolvable:$false] %s1135_s18 }
  0x8a   : > { %s1137_s1 = scalar_lea.vmem %s1136_s18, 4096  ;;  %p1138_p4 = scmp.lt.s32.totalorder %s1615_s23, %s1136_s18 }
  0x8b   : > { %p1133_p0 = pnand %p1131_p13, %p1119_p7  ;;  %p1139_p11 = scmp.lt.s32.totalorder %s1137_s1, %s1130_s11 }
  0x8d   : > { %p1134_p8 = pneg %p1133_p0  ;;  %p1140_p10 = por %p1139_p11, %p1138_p4 }
  0x8f   : > { %p1141_p3 = pnand %p1140_p10, %p1134_p8 }
  0x91   : > { %1144 = shalt.err (!%p1141_p3)
}
  0x92   : > { %s1898_s16 = smov 8   ;;  %s1899_s6 = smov 128  }
  0x93   : > { %928 = dma.hbm_to_vmem [thread:$0]  (!%p1607_p6), %s1540_s0, 2048, %s1615_s23, %s1510_s25, %s1899_s6, %s1899_s6, %s1898_s16  }
  0x94   : > { %p1900_p7 = scmp.ne.s32.totalorder %s1876_s20, 0 }
  0x95   : > { %s1642_s10 = sand.u32 (!%p1900_p7), 1, %s1275_s30   ;;  %p1901_p3 = scmp.ne.s32.totalorder (!%p1900_p7), %s1886_s8, 0 }
  0x96   : > { %312 = sbr.rel (%p1900_p7) target bundleno = 684 (0x2ac), region = 40  ;;  %s785_s22 = sshll.u32 (!%p1900_p7), %s1642_s10, 3 }
  0x97   : > { %s315_s24 = scalar_lea.sflag (!%p1900_p7), [#allocation6], %s1642_s10  ;;  %s1646_s5 = scalar_lea.vmem (!%p1900_p7), [#allocation5], %s785_s22 }
  0x9b   : > { %1230 = dma.done.wait (%p1901_p3), %s315_s24, 128  }
  0x9c   : > { %1232 = vsyncadd (%p1901_p3), %s315_s24, 4294967168  ;;  %s323_s25 = sand.u32 1, %s1543_s15   ;;  %s325_s0 = sand.u32 1, %s1263_s28  }
  0x9d   : > { %s786_s20 = sshll.u32 %s325_s0, 7  ;;  %s324_s17 = scalar_lea.sflag [#allocation9], %s323_s25 }
  0x9e   : > { %s1654_s23 = scalar_lea.vmem [#allocation8], %s786_s20  ;;  %p1902_p10 = scmp.ne.s32.totalorder %s1888_s19, 0 }
  0xa0   : > { %1234 = dma.done.wait (%p1902_p10), %s324_s17, 2048  }
  0xa1   : > { %1236 = vsyncadd (%p1902_p10), %s324_s17, 4294965248  ;;  %s1903_s9 = sld [smem:[#allocation21_spill]]  ;;  %p1904_p6 = scmp.ne.s32.totalorder %s1889_s21, 0 }
  0xa7   : > { %s334_s14 = sand.u32 1, %s1903_s9  }
  0xa8   : > { %s787_s4 = sshll.u32 %s334_s14, 7 }
  0xa9   : > { %s1661_s8 = scalar_lea.vmem [#allocation10], %s787_s4 }
  0xaa   : > { %1238 = dma.done.wait (%p1904_p6), %s324_s17, 2048  }
  0xab   : > { %1240 = vsyncadd (%p1904_p6), %s324_s17, 4294965248  ;;  %s1905_s15 = sld [smem:[#allocation24_spill]]  ;;  %s1680_s20 = scalar_lea.vmem [#allocation11], %s785_s22 }
  0xac   : > { %s1906_s16 = sld [smem:[#allocation34_spill]] }
  0xad   : > { %s1907_s21 = sld [smem:[#allocation36_spill]] }
  0xae   : > { %s1908_s17 = sld [smem:[#allocation23_spill]] }
  0xb1   : > { %s384_s11 = sld [smem:[#allocation4 + %s1905_s15]] }
  0xb2   : > { %s392_s3 = sld [smem:[#allocation4 + %s1905_s15]] }
  0xb4   : > { %p790_p5 = scmp.ne.s32.totalorder %s1908_s17, 0 }
  0xb7   : > { %p385_p12 = scmp.lt.s32.totalorder %s384_s11, 1  ;;  %400 = sbr.rel (%p790_p5) target bundleno = 190 (0xbe), region = 56 }
  0xb8   : > { %p393_p2 = scmp.lt.s32.totalorder %s392_s3, 1 }
  0xb9   : > { %s1949_s11 = smov (!%p385_p12, %s384_s11), 1 }
  0xba   : > { %s1951_s3 = smov (!%p393_p2, %s392_s3), 1  ;;  %s789_s19 = sshll.u32 %s1949_s11, 1 }
  0xbb   : > { %s1674_s6 = scalar_lea.vmem %s1906_s16, %s789_s19  ;;  %s395_s0 = scalar_lea.vmem %s1907_s21, %s1951_s3 }
  0xbc   : > { %v1307_v0 = vmov 0.0  }
  0xbd   : > { %401 = vst [vmem:[#allocation2] sm:$0xff] %v1307_v0 }
  0xbe PF: > { %v418_v1 = vld [vmem:[%s1654_s23 + $0x78] sm:$0xff]  ;;  %v1308_v2 = vmov 0.0   ;;  %vm1309_vm0 = vmmov 0   ;;  %v417_v3 = vld [vmem:[%s1654_s23 + $0x70] sm:$0xff]  ;;  %v416_v6 = vld [vmem:[%s1654_s23 + $0x68] sm:$0xff]  ;;  %s1909_s22 = sld [smem:[#allocation23_spill]] }
  0xbf   : > { %833 = vmatprep.subr.mxu0 %v1308_v2  ;;  %865 = vmatprep.mubr.msk.f32.mxu0 %vm1309_vm0, %v1308_v2  ;;  %v516_v4 = vld [vmem:[%s1661_s8 + $0x78] sm:$0xff]  ;;  %v515_v5 = vld [vmem:[%s1661_s8 + $0x70] sm:$0xff]  ;;  %v514_v7 = vld [vmem:[%s1661_s8 + $0x68] sm:$0xff] }
  0xc0   : > { %834 = vmatpush3.xpose.msra.mxu0 %v418_v1  ;;  %868 = vmatprep.subr.mxu1 %v1308_v2  ;;  %v513_v8 = vld [vmem:[%s1661_s8 + $0x60] sm:$0xff]  ;;  %v512_v10 = vld [vmem:[%s1661_s8 + $0x58] sm:$0xff]  ;;  %v511_v11 = vld [vmem:[%s1661_s8 + $0x50] sm:$0xff] }
  0xc1   : > { %835 = vmatprep.subr.mxu0 %v1308_v2  ;;  %900 = vmatprep.mubr.msk.f32.mxu1 %vm1309_vm0, %v1308_v2  ;;  %v415_v9 = vld [vmem:[%s1654_s23 + $0x60] sm:$0xff]  ;;  %v414_v12 = vld [vmem:[%s1654_s23 + $0x58] sm:$0xff]  ;;  %v510_v13 = vld [vmem:[%s1661_s8 + $0x48] sm:$0xff] }
  0xc2   : > { %869 = vmatpush3.msra.mxu1 %v516_v4  ;;  %v509_v14 = vld [vmem:[%s1661_s8 + $0x40] sm:$0xff]  ;;  %v413_v15 = vld [vmem:[%s1654_s23 + $0x50] sm:$0xff]  ;;  %v508_v16 = vld [vmem:[%s1661_s8 + $0x38] sm:$0xff] }
  0xc3   : > { %870 = vmatprep.subr.mxu1 %v1308_v2  ;;  %v507_v17 = vld [vmem:[%s1661_s8 + $0x30] sm:$0xff]  ;;  %v412_v18 = vld [vmem:[%s1654_s23 + $0x48] sm:$0xff]  ;;  %v505_v20 = vld [vmem:[%s1661_s8 + $0x20] sm:$0xff] }
  0xc4   : > { %836 = vmatpush3.xpose.msra.mxu0 %v417_v3  ;;  %871 = vmatpush3.msra.mxu1 %v515_v5  ;;  %v506_v19 = vld [vmem:[%s1661_s8 + $0x28] sm:$0xff]  ;;  %v411_v21 = vld [vmem:[%s1654_s23 + $0x40] sm:$0xff]  ;;  %v504_v22 = vld [vmem:[%s1661_s8 + $0x18] sm:$0xff]  ;;  %s791_s9 = sshll.u32 %s1909_s22, 7  ;;  %p793_p1 = scmp.ne.s32.totalorder %s1909_s22, 1 }
  0xc5   : > { %837 = vmatprep.subr.mxu0 %v1308_v2  ;;  %872 = vmatprep.subr.mxu1 %v1308_v2  ;;  %v410_v23 = vld [vmem:[%s1654_s23 + $0x38] sm:$0xff]  ;;  %v409_v24 = vld [vmem:[%s1654_s23 + $0x30] sm:$0xff]  ;;  %v408_v25 = vld [vmem:[%s1654_s23 + $0x28] sm:$0xff]  ;;  %s420_s14 = sshra.s32 %s791_s9, 7 }
  0xc6   : > { %873 = vmatpush3.msra.mxu1 %v514_v7  ;;  %v407_v26 = vld [vmem:[%s1654_s23 + $0x20] sm:$0xff]  ;;  %v406_v27 = vld [vmem:[%s1654_s23 + $0x18] sm:$0xff]  ;;  %v405_v28 = vld [vmem:[%s1654_s23 + $0x10] sm:$0xff]  ;;  %s422_s4 = scalar_lea.vmem %s1674_s6, %s420_s14 }
  0xc7   : > { %874 = vmatprep.subr.mxu1 %v1308_v2  ;;  %v404_v29 = vld [vmem:[%s1654_s23 + $0x8] sm:$0xff]  ;;  %v403_v30 = vld [vmem:[%s1654_s23] sm:$0xff]  ;;  %v402_v31 = vld [vmem:[%s1646_s5] sm:$0xff] }
  0xc8   : > { %838 = vmatpush3.xpose.msra.mxu0 %v416_v6  ;;  %875 = vmatpush3.msra.mxu1 %v513_v8  ;;  %v503_v32 = vld [vmem:[%s1661_s8 + $0x10] sm:$0xff]  ;;  %v502_v33 = vld [vmem:[%s1661_s8 + $0x8] sm:$0xff]  ;;  %v501_v34 = vld [vmem:[%s1661_s8] sm:$0xff] }
  0xc9   : > { %839 = vmatprep.subr.mxu0 %v1308_v2  ;;  %876 = vmatprep.subr.mxu1 %v1308_v2  ;;  %v792_v35 = vld [vmem:[%s422_s4] ss:$0 sm:$0xff]  ;;  %v517_v40 = vld [vmem:[#allocation2] sm:$0xff] }
  0xca   : > { %877 = vmatpush3.msra.mxu1 %v512_v10 }
  0xcb   : > { %878 = vmatprep.subr.mxu1 %v1308_v2 }
  0xcc   : > { %840 = vmatpush3.xpose.msra.mxu0 %v415_v9  ;;  %879 = vmatpush3.msra.mxu1 %v511_v11 }
  0xcd   : > { %841 = vmatprep.subr.mxu0 %v1308_v2  ;;  %880 = vmatprep.subr.mxu1 %v1308_v2 }
  0xce   : > { %881 = vmatpush3.msra.mxu1 %v510_v13 }
  0xcf   : > { %882 = vmatprep.subr.mxu1 %v1308_v2 }
  0xd0   : > { %842 = vmatpush3.xpose.msra.mxu0 %v414_v12  ;;  %883 = vmatpush3.msra.mxu1 %v509_v14 }
  0xd1   : > { %843 = vmatprep.subr.mxu0 %v1308_v2  ;;  %884 = vmatprep.subr.mxu1 %v1308_v2 }
  0xd2   : > { %885 = vmatpush3.msra.mxu1 %v508_v16 }
  0xd3   : > { %886 = vmatprep.subr.mxu1 %v1308_v2 }
  0xd4   : > { %844 = vmatpush3.xpose.msra.mxu0 %v413_v15  ;;  %887 = vmatpush3.msra.mxu1 %v507_v17 }
  0xd5   : > { %845 = vmatprep.subr.mxu0 %v1308_v2  ;;  %888 = vmatprep.subr.mxu1 %v1308_v2 }
  0xd6   : > { %889 = vmatpush3.msra.mxu1 %v506_v19 }
  0xd7   : > { %890 = vmatprep.subr.mxu1 %v1308_v2 }
  0xd8   : > { %846 = vmatpush3.xpose.msra.mxu0 %v412_v18  ;;  %891 = vmatpush3.msra.mxu1 %v505_v20 }
  0xd9   : > { %847 = vmatprep.subr.mxu0 %v1308_v2  ;;  %892 = vmatprep.subr.mxu1 %v1308_v2 }
  0xda   : > { %893 = vmatpush3.msra.mxu1 %v504_v22 }
  0xdb   : > { %894 = vmatprep.subr.mxu1 %v1308_v2 }
  0xdc   : > { %848 = vmatpush3.xpose.msra.mxu0 %v411_v21  ;;  %895 = vmatpush3.msra.mxu1 %v503_v32 }
  0xdd   : > { %849 = vmatprep.subr.mxu0 %v1308_v2  ;;  %896 = vmatprep.subr.mxu1 %v1308_v2 }
  0xde   : > { %897 = vmatpush3.msra.mxu1 %v502_v33 }
  0xdf   : > { %898 = vmatprep.subr.mxu1 %v1308_v2 }
  0xe0   : > { %850 = vmatpush3.xpose.msra.mxu0 %v410_v23  ;;  %899 = vmatpush3.msra.mxu1 %v501_v34 }
  0xe1   : > { %851 = vmatprep.subr.mxu0 %v1308_v2 }
  0xe4   : > { %852 = vmatpush3.xpose.msra.mxu0 %v409_v24 }
  0xe5   : > { %853 = vmatprep.subr.mxu0 %v1308_v2 }
  0xe8   : > { %854 = vmatpush3.xpose.msra.mxu0 %v408_v25 }
  0xe9   : > { %855 = vmatprep.subr.mxu0 %v1308_v2 }
  0xec   : > { %856 = vmatpush3.xpose.msra.mxu0 %v407_v26 }
  0xed   : > { %857 = vmatprep.subr.mxu0 %v1308_v2 }
  0xf0   : > { %858 = vmatpush3.xpose.msra.mxu0 %v406_v27 }
  0xf1   : > { %859 = vmatprep.subr.mxu0 %v1308_v2 }
  0xf4   : > { %860 = vmatpush3.xpose.msra.mxu0 %v405_v28 }
  0xf5   : > { %861 = vmatprep.subr.mxu0 %v1308_v2 }
  0xf8   : > { %862 = vmatpush3.xpose.msra.mxu0 %v404_v29 }
  0xf9   : > { %863 = vmatprep.subr.mxu0 %v1308_v2 }
  0xfc   : > { %864 = vmatpush3.xpose.msra.mxu0 %v403_v30 }
  0xff   : > { %866 = vmatmul.mubr.f32.vlgmr.msra.gmra.mxu0 %v402_v31 }
 0x1bf   : > { %v496_v36 = vpop.f32.mrf.mxu0 }
 0x1c0   : > { %v497_v37 = vadd.f32 %v792_v35, %v496_v36 }
 0x1c1   : > { %v867_v38 = vpop.f32.mrf.mxu0 }
 0x1c2   : > { %v500_v39 = vmax.f32 %v497_v37, 0.0 }
 0x1c4   : > { %901 = vmatmul.mubr.f32.vlgmr.msra.gmra.mxu1 %v500_v39 }
 0x283   : > { %593 = sbr.rel (%p793_p1) target bundleno = 658 (0x292), region = 60 }
 0x284   : > { %v584_v41 = vpop.f32.mrf.mxu1 }
 0x285   : > { %v588_v42 = vadd.f32 %v584_v41, %v517_v40 }
 0x286   : > { %v902_v43 = vpop.f32.mrf.mxu1 }
 0x287   : > { %589 = vst [vmem:[#allocation2] sm:$0xff] %v588_v42 }
 0x288   : > { %v794_v45 = vld [vmem:[%s395_s0] ss:$0 sm:$0xff] }
 0x28e   : > { %v594_v44 = vld [vmem:[#allocation2] sm:$0xff] }
 0x28f   : > { %v602_v46 = vadd.f32 %v794_v45, %v594_v44 }
 0x291   : > { %603 = vst [vmem:[%s1680_s20] sm:$0xff] %v602_v46 }
 0x292 PF: > { %s1911_s15 = sld [smem:[#allocation24_spill]]  ;;  %s618_s6 = sshll.u32 %s1680_s20, 4  ;;  %s619_s6 = int_to_ptr.vmem [resolvable:$true] %s618_s6 }
 0x293   : > { %s1912_s1 = sld [smem:[#allocation37_spill]]  ;;  %s605_s24 = scalar_lea.sflag [#allocation7], %s1642_s10 }
 0x294   : > { %s1145_s25 = scalar_lea.vmem %s619_s6, 128  ;;  %p1913_p13 = scmp.ne.s32.totalorder %s1890_s13, 0 }
 0x295   : > { %p1146_p9 = scmp.ne.s32.totalorder %s619_s6, %s1145_s25  ;;  %s1310_s3 = smov [#allocation11]  }
 0x296   : > { %s1149_s21 = sshll.u32 %s1310_s3, 4  ;;  %s1150_s21 = int_to_ptr.vmem [resolvable:$false] %s1149_s21 }
 0x297   : > { %p1147_p0 = pnand %p1146_p9, %p1913_p13  ;;  %s1151_s0 = scalar_lea.vmem %s1150_s21, 256 }
 0x298   : > { %s796_s11 = sshll.u32 %s1911_s15, 7  ;;  %p1152_p4 = scmp.lt.s32.totalorder %s619_s6, %s1150_s21 }
 0x299   : > { %s616_s16 = scalar_lea.hbm %s1912_s1, %s796_s11  ;;  %p1148_p8 = pneg %p1147_p0 }
 0x29a   : > { %p1153_p11 = scmp.lt.s32.totalorder %s1151_s0, %s1145_s25 }
 0x29c   : > { %p1154_p7 = por %p1153_p11, %p1152_p4 }
 0x29e   : > { %p1155_p3 = pnand %p1154_p7, %p1148_p8 }
 0x2a0   : > { %1158 = shalt.err (!%p1155_p3)
}
 0x2a1   : > { %s1159_s17 = scalar_lea.hbm %s616_s16, 128  ;;  %s1163_s22 = scalar_lea.hbm %s1912_s1, 512 }
 0x2a2   : > { %p1160_p10 = scmp.ne.s32.totalorder %s616_s16, %s1159_s17  ;;  %p1164_p2 = scmp.lt.s32.totalorder %s616_s16, %s1912_s1 }
 0x2a3   : > { %p1165_p5 = scmp.lt.s32.totalorder %s1163_s22, %s1159_s17 }
 0x2a4   : > { %p1161_p6 = pnand %p1160_p10, %p1913_p13 }
 0x2a5   : > { %p1166_p1 = por %p1165_p5, %p1164_p2 }
 0x2a6   : > { %p1162_p12 = pneg %p1161_p6 }
 0x2a8   : > { %p1167_p9 = pnand %p1166_p1, %p1162_p12 }
 0x2aa   : > { %1170 = shalt.err (!%p1167_p9)
}
 0x2ab   : > { %913 = dma.vmem_to_hbm [thread:$0]  (%p1913_p13), %s619_s6, 128, %s616_s16, %s605_s24  }
 0x2ac PF: > { %p934_p0 = scmp.ge.s32.totalorder %s1299_s12, 2  ;;  %s630_s4 = sand.u32 1, %s1271_s29  }
 0x2ad   : > { %p1914_p8 = scmp.ne.s32.totalorder %s1891_s27, 0  ;;  %s631_s5 = scalar_lea.sflag [#allocation7], %s630_s4 }
 0x2af   : > { %p930_p4 = pnand %p934_p0, %p1914_p8 }
 0x2b1   : > { %p931_p11 = pneg %p930_p4 }
 0x2b3   : > { %1242 = dma.done.wait (%p931_p11), %s631_s5, 128  }
 0x2b4   : > { %1244 = vsyncadd (%p931_p11), %s631_s5, 4294967168  ;;  %s29_s12 = sadd.s32 1, %s1299_s12   ;;  %s1916_s24 = sld [smem:[#allocation21_spill]] }
 0x2b5   : > { %p1782_p7 = scmp.ge.s32.totalorder %s29_s12, 10   ;;  %s1917_s13 = sld [smem:[#allocation30_spill]] }
 0x2b6   : > { %s1918_s8 = sld [smem:[#allocation22_spill]]  ;;  %s1925_s25 = smov %s1255_s26 }
 0x2b7   : > { %s1919_s0 = sld [smem:[#allocation29_spill]]  ;;  %s1927_s27 = smov %s1263_s28 }
 0x2b8   : > { %s1920_s15 = sld [smem:[#allocation31_spill]]  ;;  %s1929_s29 = smov %s1275_s30 }
 0x2b9   : > { %s1921_s11 = sld [smem:[#allocation25_spill]]  ;;  %s1930_s30 = smov %s1279_s7 }
 0x2ba   : > { %s1922_s9 = sld [smem:[#allocation26_spill]] }
 0x2bb   : > { %s1923_s10 = sld [smem:[#allocation27_spill]]  ;;  %s1926_s26 = smov %s1917_s13 }
 0x2bc   : > { %s1924_s19 = sld [smem:[#allocation28_spill]]  ;;  %s1928_s28 = smov %s1918_s8 }
 0x2be   : > { %s1931_s7 = smov %s1920_s15  ;;  %28 = sbr.rel (!%p1782_p7) target bundleno = 23 (0x17), region = 124 }
 0x2bf   : > { %s1932_s8 = smov %s1921_s11 }
 0x2c2   : > { %s1933_s11 = smov %s1924_s19 }
 0x2c3   :  { %636 = vsyncpa [#allocation6], 1 }
 0x2c4   :  { %638 = vsyncpa [#allocation6 + $0x1], 1 }
 0x2c5   :  { %639 = vsyncpa [#allocation9], 1 }
 0x2c6   :  { %641 = vsyncpa [#allocation9 + $0x1], 1 }
 0x2c7   :  { %642 = vsyncpa [#allocation7], 1 }
 0x2c8   :  { %644 = vsyncpa [#allocation7 + $0x1], 1 }

</bundles_post_ra>
